<compile_context>
chip_gen: v7x
topology: tpu7x:2x2x1
jax: 0.10.0
libtpu: 0.0.40
codegen_flags: <defaults>
</compile_context>

<pallas_src>
import functools

import jax
import jax.numpy as jnp
from jax.experimental import pallas as pl
from jax.experimental.pallas import tpu as pltpu

BN_EPS = 1e-5


def _round_up(x: int, m: int) -> int:
    return ((x + m - 1) // m) * m


def _batch_tile(b: int, target: int, align: int) -> int:
    """Aligned batch tile <= max(target, align); B gets padded to a multiple of it."""
    target = max(target, align)
    if b <= target:
        return _round_up(b, align)
    return (target // align) * align


def _vmem_limit(working_set_bytes: int) -> int:
    """Scoped-VMEM request: working set + headroom, clamped to a safe range.

    Floor 32 MiB (>= every generation's scoped default), cap 100 MiB (below
    v5e/v6e's 128 MiB physical).  Typical bf16 BYOL sizes land around ~50 MiB,
    which keeps headroom on v7x's 64 MiB per-TC VMEM.
    """
    want = int(working_set_bytes * 1.3) + (2 << 20)
    return max(32 << 20, min(want, 100 << 20))


# ---------------------------------------------------------------------------
# Pass 1: h = x @ W1 (no bias) + per-batch-tile column sum / sum-of-squares.
# Grid: (batch tiles,) -- "parallel".  W1 is grid-invariant (fetched once).
# ---------------------------------------------------------------------------
def _matmul_stats_kernel(x_ref, w1_ref, h_ref, sum_ref, ssq_ref):
    # Single full-K contraction per batch tile; f32 accumulation on the MXU.
    h = jnp.dot(x_ref[...], w1_ref[...], preferred_element_type=jnp.float32)
    h_ref[...] = h.astype(h_ref.dtype)
    # f32 statistics taken BEFORE the (possibly bf16) store of h.
    sum_ref[...] = jnp.sum(h, axis=0, keepdims=True)[None]        # (1,1,Hp)
    ssq_ref[...] = jnp.sum(h * h, axis=0, keepdims=True)[None]    # (1,1,Hp)


# ---------------------------------------------------------------------------
# Pass 2: y = relu(BN(h)) @ W2 + b2, with BN folded into one affine computed
# in-kernel from the per-tile statistics (full-batch mean / biased variance).
# Grid: (batch tiles,) -- "parallel".  W2, b2, gamma, beta, stats grid-invariant.
# ---------------------------------------------------------------------------
def _bn_relu_matmul_kernel(h_ref, sum_ref, ssq_ref, gamma_ref, beta_ref,
                           w2_ref, b2_ref, o_ref, *, inv_b, eps):
    total_sum = jnp.sum(sum_ref[...], axis=0)                     # (1, Hp) f32
    total_ssq = jnp.sum(ssq_ref[...], axis=0)                     # (1, Hp) f32
    mean = total_sum * inv_b
    var = jnp.maximum(total_ssq * inv_b - mean * mean, 0.0)       # biased var
    scale = gamma_ref[...] * jax.lax.rsqrt(var + eps)             # (1, Hp) f32
    shift = beta_ref[...] - mean * scale                          # (1, Hp) f32

    # Folded BatchNorm = one FMA per element; elementwise math in f32.
    hn = h_ref[...].astype(jnp.float32) * scale + shift
    r = jnp.maximum(hn, 0.0).astype(w2_ref.dtype)

    acc = jnp.dot(r, w2_ref[...], preferred_element_type=jnp.float32)
    o_ref[...] = (acc + b2_ref[...]).astype(o_ref.dtype)


def byol_projection_head(x, w1, gamma, beta, w2, b2, *, eps=BN_EPS,
                         tb=256, compute_dtype=jnp.bfloat16):
    """Forward pass of BYOLProjectionHead.

    x:     (B, D_in)
    w1:    (D_in, H)   -- first Linear weight, pre-transposed (PyTorch W1.T)
    gamma: (H,)        -- BatchNorm1d weight
    beta:  (H,)        -- BatchNorm1d bias
    w2:    (H, D_out)  -- second Linear weight, pre-transposed (PyTorch W2.T)
    b2:    (D_out,)    -- second Linear bias
    compute_dtype: dtype fed to the MXU / used for the streamed h intermediate
                   (bf16 default); accumulation and BN math stay f32.
    """
    B, d_in = x.shape
    d_in_w, hidden = w1.shape
    hidden_w, d_out = w2.shape
    assert d_in == d_in_w and hidden == hidden_w

    out_dtype = x.dtype
    cdt = jnp.dtype(compute_dtype)

    # Lane-dense padding of feature dims (zero columns are exact no-ops).
    hp = _round_up(hidden, 128)
    dp = _round_up(d_out, 128)

    x = x.astype(cdt)
    w1 = w1.astype(cdt)
    w2 = w2.astype(cdt)
    gamma = gamma.reshape(1, hidden).astype(jnp.float32)
    beta = beta.reshape(1, hidden).astype(jnp.float32)
    b2 = b2.reshape(1, d_out).astype(jnp.float32)

    if hp != hidden:
        w1 = jnp.pad(w1, ((0, 0), (0, hp - hidden)))
        w2 = jnp.pad(w2, ((0, hp - hidden), (0, 0)))
        gamma = jnp.pad(gamma, ((0, 0), (0, hp - hidden)))
        beta = jnp.pad(beta, ((0, 0), (0, hp - hidden)))
    if dp != d_out:
        w2 = jnp.pad(w2, ((0, 0), (0, dp - d_out)))
        b2 = jnp.pad(b2, ((0, 0), (0, dp - d_out)))

    # Batch tile: 16-aligned (bf16 sublane packing); pad B up to a multiple.
    # Padded zero rows contribute exactly 0 to sum/ssq, so dividing by the true
    # B keeps the BatchNorm statistics exact.
    TB = _batch_tile(B, tb, 16)
    Bp = _round_up(B, TB)
    if Bp != B:
        x = jnp.pad(x, ((0, Bp - B), (0, 0)))
    nb = Bp // TB

    cbytes = cdt.itemsize
    obytes = jnp.dtype(out_dtype).itemsize
    # Working-set estimates (double-buffered blocks; weights allocated x2 too).
    vmem1 = (2 * TB * d_in * cbytes        # x tile
             + 2 * d_in * hp * cbytes      # resident W1
             + 2 * TB * hp * cbytes        # h out tile
             + 4 * hp * 4)                 # sum / ssq out tiles
    vmem2 = (2 * TB * hp * cbytes          # h tile
             + 2 * hp * dp * cbytes        # resident W2
             + 4 * nb * hp * 4             # sum_p / ssq_p
             + 4 * hp * 4 + 2 * dp * 4     # gamma / beta / b2
             + 2 * TB * dp * obytes)       # out tile

    cp1 = pltpu.CompilerParams(dimension_semantics=("parallel",),
                               vmem_limit_bytes=_vmem_limit(vmem1))
    cp2 = pltpu.CompilerParams(dimension_semantics=("parallel",),
                               vmem_limit_bytes=_vmem_limit(vmem2))

    # ---- Pass 1: h = x @ W1 + per-tile BN statistics ------------------------
    h, sum_p, ssq_p = pl.pallas_call(
        _matmul_stats_kernel,
        out_shape=(
            jax.ShapeDtypeStruct((Bp, hp), cdt),          # h streamed in bf16
            jax.ShapeDtypeStruct((nb, 1, hp), jnp.float32),
            jax.ShapeDtypeStruct((nb, 1, hp), jnp.float32),
        ),
        grid_spec=pltpu.PrefetchScalarGridSpec(
            num_scalar_prefetch=0,
            grid=(nb,),
            in_specs=[
                pl.BlockSpec((TB, d_in), lambda i: (i, 0)),
                pl.BlockSpec((d_in, hp), lambda i: (0, 0)),   # W1: grid-invariant
            ],
            out_specs=[
                pl.BlockSpec((TB, hp), lambda i: (i, 0)),
                pl.BlockSpec((1, 1, hp), lambda i: (i, 0, 0)),
                pl.BlockSpec((1, 1, hp), lambda i: (i, 0, 0)),
            ],
        ),
        compiler_params=cp1,
    )(x, w1)

    # ---- Pass 2: y = relu(h*scale + shift) @ W2 + b2 -------------------------
    out = pl.pallas_call(
        functools.partial(_bn_relu_matmul_kernel, inv_b=1.0 / B, eps=eps),
        out_shape=jax.ShapeDtypeStruct((Bp, dp), out_dtype),
        grid_spec=pltpu.PrefetchScalarGridSpec(
            num_scalar_prefetch=0,
            grid=(nb,),
            in_specs=[
                pl.BlockSpec((TB, hp), lambda i: (i, 0)),
                pl.BlockSpec((nb, 1, hp), lambda i: (0, 0, 0)),  # stats: invariant
                pl.BlockSpec((nb, 1, hp), lambda i: (0, 0, 0)),
                pl.BlockSpec((1, hp), lambda i: (0, 0)),
                pl.BlockSpec((1, hp), lambda i: (0, 0)),
                pl.BlockSpec((hp, dp), lambda i: (0, 0)),        # W2: grid-invariant
                pl.BlockSpec((1, dp), lambda i: (0, 0)),
            ],
            out_specs=pl.BlockSpec((TB, dp), lambda i: (i, 0)),
        ),
        compiler_params=cp2,
    )(h, sum_p, ssq_p, gamma, beta, w2, b2)

    if Bp != B or dp != d_out:
        out = out[:B, :d_out]
    return out


if __name__ == "__main__":
    # Small shapes consistent with the module (input_dim -> hidden_dim -> output_dim).
    # batch=24 with tb=16 forces 2 batch tiles + batch padding, exercising the
    # cross-tile BN-statistic reduction and the zero-row padding path.
    batch, input_dim, hidden_dim, output_dim = 24, 32, 64, 16

    key = jax.random.PRNGKey(0)
    kx, kw1, kw2, kb2 = jax.random.split(key, 4)

    x = jax.random.normal(kx, (batch, input_dim), dtype=jnp.float32)

    # PyTorch-layout parameters, then pre-transpose the Linear weights.
    w1_pt = jax.random.normal(kw1, (hidden_dim, input_dim), dtype=jnp.float32) * 0.05
    w2_pt = jax.random.normal(kw2, (output_dim, hidden_dim), dtype=jnp.float32) * 0.05
    gamma = jnp.ones((hidden_dim,), dtype=jnp.float32)    # BN weight default
    beta = jnp.zeros((hidden_dim,), dtype=jnp.float32)    # BN bias default
    b2 = jax.random.normal(kb2, (output_dim,), dtype=jnp.float32) * 0.01

    w1_t = w1_pt.T                                        # (input_dim, hidden_dim)
    w2_t = w2_pt.T                                        # (hidden_dim, output_dim)

    head = jax.jit(functools.partial(byol_projection_head, tb=16))
    y = head(x, w1_t, gamma, beta, w2_t, b2)
    jax.block_until_ready(y)

    # Pure-JAX f32 reference (training-mode BatchNorm1d forward: batch stats,
    # biased variance).  Kernel feeds the MXU in bf16 (perf path), so tolerance
    # is set for bf16 operand rounding.
    h_ref = x @ w1_t
    mean = h_ref.mean(axis=0)
    var = ((h_ref - mean) ** 2).mean(axis=0)
    hn = (h_ref - mean) / jnp.sqrt(var + BN_EPS) * gamma + beta
    ref = jnp.maximum(hn, 0.0) @ w2_t + b2

    assert y.shape == ref.shape, f"shape mismatch {y.shape} vs {ref.shape}"
    assert jnp.allclose(y, ref, atol=3e-2, rtol=3e-2), "mismatch vs reference"

    print("KERNEL_OK")
</pallas_src>

<mosaic_0001>
module attributes {stable_mosaic.version = 11 : i64} {
  func.func @_matmul_stats_kernel(%arg0: i32, %arg1: memref<16x32xbf16, #tpu.memory_space<vmem>>, %arg2: memref<32x128xbf16, #tpu.memory_space<vmem>>, %arg3: memref<16x128xbf16, #tpu.memory_space<vmem>>, %arg4: memref<1x1x128xf32, #tpu.memory_space<vmem>>, %arg5: memref<1x1x128xf32, #tpu.memory_space<vmem>>) attributes {dimension_semantics = [#tpu.dimension_semantics<parallel>], iteration_bounds = array<i64: 2>, scalar_prefetch = 0 : i64, scratch_operands = 0 : i64, tpu.core_type = #tpu.core_type<tc>, window_params = [{transform_indices = @transform_0, window_bounds = array<i64: 16, 32>}, {pipeline_mode = #tpu.pipeline_mode<synchronous>, transform_indices = @transform_1, window_bounds = array<i64: 32, 128>}, {transform_indices = @transform_2, window_bounds = array<i64: 16, 128>}, {transform_indices = @transform_3, window_bounds = array<i64: 1, 1, 128>}, {transform_indices = @transform_4, window_bounds = array<i64: 1, 1, 128>}]} {
    %c0 = arith.constant 0 : index
    %c0_0 = arith.constant 0 : index
    %0 = vector.load %arg1[%c0, %c0_0] : memref<16x32xbf16, #tpu.memory_space<vmem>>, vector<16x32xbf16>
    %c0_1 = arith.constant 0 : index
    %c0_2 = arith.constant 0 : index
    %1 = vector.load %arg2[%c0_1, %c0_2] : memref<32x128xbf16, #tpu.memory_space<vmem>>, vector<32x128xbf16>
    %cst = arith.constant dense<0.000000e+00> : vector<16x128xf32>
    %2 = tpu.matmul %0, %1, %cst {dimension_numbers = #tpu.dot_dimension_numbers<[1], [0], [0], [1], [0, 0, 1, 1], [], []>} : vector<16x32xbf16>, vector<32x128xbf16>, vector<16x128xf32> -> vector<16x128xf32>
    %3 = arith.truncf %2 : vector<16x128xf32> to vector<16x128xbf16>
    %c0_3 = arith.constant 0 : index
    %c0_4 = arith.constant 0 : index
    %4 = vector.load %arg3[%c0_3, %c0_4] : memref<16x128xbf16, #tpu.memory_space<vmem>>, vector<16x128xbf16>
    tpu.vector_store %arg3[%c0_3, %c0_4], %3 {strides = array<i32>} : memref<16x128xbf16, #tpu.memory_space<vmem>>, vector<16x128xbf16>,
    %cst_5 = arith.constant dense<0.000000e+00> : vector<128xf32>
    %5 = vector.multi_reduction <add>, %2, %cst_5 [0] : vector<16x128xf32> to vector<128xf32>
    %6 = vector.shape_cast %5 : vector<128xf32> to vector<1x128xf32>
    %7 = vector.shape_cast %6 : vector<1x128xf32> to vector<1x1x128xf32>
    %c0_6 = arith.constant 0 : index
    %c0_7 = arith.constant 0 : index
    %c0_8 = arith.constant 0 : index
    %8 = vector.load %arg4[%c0_6, %c0_7, %c0_8] : memref<1x1x128xf32, #tpu.memory_space<vmem>>, vector<1x1x128xf32>
    tpu.vector_store %arg4[%c0_6, %c0_7, %c0_8], %7 {strides = array<i32>} : memref<1x1x128xf32, #tpu.memory_space<vmem>>, vector<1x1x128xf32>,
    %9 = arith.mulf %2, %2 : vector<16x128xf32>
    %cst_9 = arith.constant dense<0.000000e+00> : vector<128xf32>
    %10 = vector.multi_reduction <add>, %9, %cst_9 [0] : vector<16x128xf32> to vector<128xf32>
    %11 = vector.shape_cast %10 : vector<128xf32> to vector<1x128xf32>
    %12 = vector.shape_cast %11 : vector<1x128xf32> to vector<1x1x128xf32>
    %c0_10 = arith.constant 0 : index
    %c0_11 = arith.constant 0 : index
    %c0_12 = arith.constant 0 : index
    %13 = vector.load %arg5[%c0_10, %c0_11, %c0_12] : memref<1x1x128xf32, #tpu.memory_space<vmem>>, vector<1x1x128xf32>
    tpu.vector_store %arg5[%c0_10, %c0_11, %c0_12], %12 {strides = array<i32>} : memref<1x1x128xf32, #tpu.memory_space<vmem>>, vector<1x1x128xf32>,
    return
  }
  func.func @transform_0(%arg0: i32) -> (i32, i32) {
    %c0_i32 = arith.constant 0 : i32
    %c0_i32_0 = arith.constant 0 : i32
    return %arg0, %c0_i32 : i32, i32
  }
  func.func @transform_1(%arg0: i32) -> (i32, i32) {
    %c0_i32 = arith.constant 0 : i32
    %c0_i32_0 = arith.constant 0 : i32
    %c0_i32_1 = arith.constant 0 : i32
    return %c0_i32, %c0_i32_0 : i32, i32
  }
  func.func @transform_2(%arg0: i32) -> (i32, i32) {
    %c0_i32 = arith.constant 0 : i32
    %c0_i32_0 = arith.constant 0 : i32
    return %arg0, %c0_i32 : i32, i32
  }
  func.func @transform_3(%arg0: i32) -> (i32, i32, i32) {
    %c0_i32 = arith.constant 0 : i32
    %c0_i32_0 = arith.constant 0 : i32
    %c0_i32_1 = arith.constant 0 : i32
    return %arg0, %c0_i32, %c0_i32_0 : i32, i32, i32
  }
  func.func @transform_4(%arg0: i32) -> (i32, i32, i32) {
    %c0_i32 = arith.constant 0 : i32
    %c0_i32_0 = arith.constant 0 : i32
    %c0_i32_1 = arith.constant 0 : i32
    return %arg0, %c0_i32, %c0_i32_0 : i32, i32, i32
  }
}

module attributes {stable_mosaic.version = 11 : i64} {
  func.func @_bn_relu_matmul_kernel(%arg0: i32, %arg1: memref<16x128xbf16, #tpu.memory_space<vmem>>, %arg2: memref<2x1x128xf32, #tpu.memory_space<vmem>>, %arg3: memref<2x1x128xf32, #tpu.memory_space<vmem>>, %arg4: memref<1x128xf32, #tpu.memory_space<vmem>>, %arg5: memref<1x128xf32, #tpu.memory_space<vmem>>, %arg6: memref<128x128xbf16, #tpu.memory_space<vmem>>, %arg7: memref<1x128xf32, #tpu.memory_space<vmem>>, %arg8: memref<16x128xf32, #tpu.memory_space<vmem>>) attributes {dimension_semantics = [#tpu.dimension_semantics<parallel>], iteration_bounds = array<i64: 2>, scalar_prefetch = 0 : i64, scratch_operands = 0 : i64, tpu.core_type = #tpu.core_type<tc>, window_params = [{transform_indices = @transform_0, window_bounds = array<i64: 16, 128>}, {pipeline_mode = #tpu.pipeline_mode<synchronous>, transform_indices = @transform_1, window_bounds = array<i64: 2, 1, 128>}, {pipeline_mode = #tpu.pipeline_mode<synchronous>, transform_indices = @transform_2, window_bounds = array<i64: 2, 1, 128>}, {pipeline_mode = #tpu.pipeline_mode<synchronous>, transform_indices = @transform_3, window_bounds = array<i64: 1, 128>}, {pipeline_mode = #tpu.pipeline_mode<synchronous>, transform_indices = @transform_4, window_bounds = array<i64: 1, 128>}, {pipeline_mode = #tpu.pipeline_mode<synchronous>, transform_indices = @transform_5, window_bounds = array<i64: 128, 128>}, {pipeline_mode = #tpu.pipeline_mode<synchronous>, transform_indices = @transform_6, window_bounds = array<i64: 1, 128>}, {transform_indices = @transform_7, window_bounds = array<i64: 16, 128>}]} {
    %c0 = arith.constant 0 : index
    %c0_0 = arith.constant 0 : index
    %c0_1 = arith.constant 0 : index
    %0 = vector.load %arg2[%c0, %c0_0, %c0_1] : memref<2x1x128xf32, #tpu.memory_space<vmem>>, vector<2x1x128xf32>
    %cst = arith.constant dense<0.000000e+00> : vector<1x128xf32>
    %1 = vector.multi_reduction <add>, %0, %cst [0] : vector<2x1x128xf32> to vector<1x128xf32>
    %c0_2 = arith.constant 0 : index
    %c0_3 = arith.constant 0 : index
    %c0_4 = arith.constant 0 : index
    %2 = vector.load %arg3[%c0_2, %c0_3, %c0_4] : memref<2x1x128xf32, #tpu.memory_space<vmem>>, vector<2x1x128xf32>
    %cst_5 = arith.constant dense<0.000000e+00> : vector<1x128xf32>
    %3 = vector.multi_reduction <add>, %2, %cst_5 [0] : vector<2x1x128xf32> to vector<1x128xf32>
    %cst_6 = arith.constant 0.0416666679 : f32
    %4 = vector.broadcast %cst_6 : f32 to vector<1x128xf32>
    %5 = arith.mulf %1, %4 : vector<1x128xf32>
    %cst_7 = arith.constant 0.0416666679 : f32
    %6 = vector.broadcast %cst_7 : f32 to vector<1x128xf32>
    %7 = arith.mulf %3, %6 : vector<1x128xf32>
    %8 = arith.mulf %5, %5 : vector<1x128xf32>
    %9 = arith.subf %7, %8 : vector<1x128xf32>
    %cst_8 = arith.constant 0.000000e+00 : f32
    %10 = vector.broadcast %cst_8 : f32 to vector<1x128xf32>
    %11 = arith.maximumf %9, %10 : vector<1x128xf32>
    %c0_9 = arith.constant 0 : index
    %c0_10 = arith.constant 0 : index
    %12 = vector.load %arg4[%c0_9, %c0_10] : memref<1x128xf32, #tpu.memory_space<vmem>>, vector<1x128xf32>
    %cst_11 = arith.constant 9.99999974E-6 : f32
    %13 = vector.broadcast %cst_11 : f32 to vector<1x128xf32>
    %14 = arith.addf %11, %13 : vector<1x128xf32>
    %15 = math.rsqrt %14 : vector<1x128xf32>
    %16 = arith.mulf %12, %15 : vector<1x128xf32>
    %c0_12 = arith.constant 0 : index
    %c0_13 = arith.constant 0 : index
    %17 = vector.load %arg5[%c0_12, %c0_13] : memref<1x128xf32, #tpu.memory_space<vmem>>, vector<1x128xf32>
    %18 = arith.mulf %5, %16 : vector<1x128xf32>
    %19 = arith.subf %17, %18 : vector<1x128xf32>
    %c0_14 = arith.constant 0 : index
    %c0_15 = arith.constant 0 : index
    %20 = vector.load %arg1[%c0_14, %c0_15] : memref<16x128xbf16, #tpu.memory_space<vmem>>, vector<16x128xbf16>
    %21 = arith.extf %20 : vector<16x128xbf16> to vector<16x128xf32>
    %22 = vector.broadcast %16 : vector<1x128xf32> to vector<16x128xf32>
    %23 = arith.mulf %21, %22 : vector<16x128xf32>
    %24 = vector.broadcast %19 : vector<1x128xf32> to vector<16x128xf32>
    %25 = arith.addf %23, %24 : vector<16x128xf32>
    %cst_16 = arith.constant 0.000000e+00 : f32
    %26 = vector.broadcast %cst_16 : f32 to vector<16x128xf32>
    %27 = arith.maximumf %25, %26 : vector<16x128xf32>
    %28 = arith.truncf %27 : vector<16x128xf32> to vector<16x128xbf16>
    %c0_17 = arith.constant 0 : index
    %c0_18 = arith.constant 0 : index
    %29 = vector.load %arg6[%c0_17, %c0_18] : memref<128x128xbf16, #tpu.memory_space<vmem>>, vector<128x128xbf16>
    %cst_19 = arith.constant dense<0.000000e+00> : vector<16x128xf32>
    %30 = tpu.matmul %28, %29, %cst_19 {dimension_numbers = #tpu.dot_dimension_numbers<[1], [0], [0], [1], [0, 0, 1, 1], [], []>} : vector<16x128xbf16>, vector<128x128xbf16>, vector<16x128xf32> -> vector<16x128xf32>
    %c0_20 = arith.constant 0 : index
    %c0_21 = arith.constant 0 : index
    %31 = vector.load %arg7[%c0_20, %c0_21] : memref<1x128xf32, #tpu.memory_space<vmem>>, vector<1x128xf32>
    %32 = vector.broadcast %31 : vector<1x128xf32> to vector<16x128xf32>
    %33 = arith.addf %30, %32 : vector<16x128xf32>
    %c0_22 = arith.constant 0 : index
    %c0_23 = arith.constant 0 : index
    %34 = vector.load %arg8[%c0_22, %c0_23] : memref<16x128xf32, #tpu.memory_space<vmem>>, vector<16x128xf32>
    tpu.vector_store %arg8[%c0_22, %c0_23], %33 {strides = array<i32>} : memref<16x128xf32, #tpu.memory_space<vmem>>, vector<16x128xf32>,
    return
  }
  func.func @transform_0(%arg0: i32) -> (i32, i32) {
    %c0_i32 = arith.constant 0 : i32
    %c0_i32_0 = arith.constant 0 : i32
    return %arg0, %c0_i32 : i32, i32
  }
  func.func @transform_1(%arg0: i32) -> (i32, i32, i32) {
    %c0_i32 = arith.constant 0 : i32
    %c0_i32_0 = arith.constant 0 : i32
    %c0_i32_1 = arith.constant 0 : i32
    %c0_i32_2 = arith.constant 0 : i32
    return %c0_i32, %c0_i32_0, %c0_i32_1 : i32, i32, i32
  }
  func.func @transform_2(%arg0: i32) -> (i32, i32, i32) {
    %c0_i32 = arith.constant 0 : i32
    %c0_i32_0 = arith.constant 0 : i32
    %c0_i32_1 = arith.constant 0 : i32
    %c0_i32_2 = arith.constant 0 : i32
    return %c0_i32, %c0_i32_0, %c0_i32_1 : i32, i32, i32
  }
  func.func @transform_3(%arg0: i32) -> (i32, i32) {
    %c0_i32 = arith.constant 0 : i32
    %c0_i32_0 = arith.constant 0 : i32
    %c0_i32_1 = arith.constant 0 : i32
    return %c0_i32, %c0_i32_0 : i32, i32
  }
  func.func @transform_4(%arg0: i32) -> (i32, i32) {
    %c0_i32 = arith.constant 0 : i32
    %c0_i32_0 = arith.constant 0 : i32
    %c0_i32_1 = arith.constant 0 : i32
    return %c0_i32, %c0_i32_0 : i32, i32
  }
  func.func @transform_5(%arg0: i32) -> (i32, i32) {
    %c0_i32 = arith.constant 0 : i32
    %c0_i32_0 = arith.constant 0 : i32
    %c0_i32_1 = arith.constant 0 : i32
    return %c0_i32, %c0_i32_0 : i32, i32
  }
  func.func @transform_6(%arg0: i32) -> (i32, i32) {
    %c0_i32 = arith.constant 0 : i32
    %c0_i32_0 = arith.constant 0 : i32
    %c0_i32_1 = arith.constant 0 : i32
    return %c0_i32, %c0_i32_0 : i32, i32
  }
  func.func @transform_7(%arg0: i32) -> (i32, i32) {
    %c0_i32 = arith.constant 0 : i32
    %c0_i32_0 = arith.constant 0 : i32
    return %arg0, %c0_i32 : i32, i32
  }
}

</mosaic_0001>

<bundles_post_ra>
// kernel: byol_projection_head.2
= control target key start
LH: loop header
LB: loop body
LE: loop exit
PB: predicated region body
PF: predicated region fallthrough
CT: control target
= control target key end

     0   :  { %s504_s15 = smov 0   ;;  %s538_s0 = inlined_call_operand.vmem [shape: bf16[32,32], index: 0, kind: input, shape index: {}]   ;;  %s539_s1 = inlined_call_operand.vmem [shape: bf16[32,128], index: 1, kind: input, shape index: {}]   ;;  %s540_s2 = inlined_call_operand.vmem [shape: bf16[32,128], index: 2, kind: output, shape index: {0}]   ;;  %s541_s3 = inlined_call_operand.vmem [shape: f32[2,1,128], index: 3, kind: output, shape index: {1}]   ;;  %s542_s4 = inlined_call_operand.vmem [shape: f32[2,1,128], index: 4, kind: output, shape index: {2}]  }
   0x1 LB: > { %s510_s16 = sadd.s32 4294967295, %s475_s15   ;;  %p425_p0 = scmp.ge.s32.totalorder %s475_s15, 1  ;;  %s475_s15 = sphi %s504_s15, %s15_s15  }
   0x2   : > { %p168_p1 = scmp.lt.s32.totalorder %s475_s15, 3 }
   0x4   : > { %p169_p2 = pnand %p425_p0, %p168_p1 }
   0x5   : > { %v466_v0 = vld [vmem:[%s539_s1] sm:$0xff] (!%p169_p2)   ;;  %v477_v1 = vmov (!%p169_p2), 0.0   ;;  %v467_v2 = vld [vmem:[%s539_s1 + $0x8] sm:$0xff] (!%p169_p2)   ;;  %vm478_vm0 = vmmov (!%p169_p2), 0   ;;  %s426_s21 = sshll.u32 (!%p169_p2), %s510_s16, 1  ;;  %vm242_vm1 = vcmask (!%p169_p2), 261120  }
   0x6   : > { %172 = sbr.rel (%p169_p2) target bundleno = 248 (0xf8), region = 28  ;;  %448 = vmatprep.subr.bf16.mxu0 (!%p169_p2), %v477_v1  ;;  %452 = vmatprep.mubr.msk.bf16.mxu0 (!%p169_p2), %vm478_vm0, %v477_v1  ;;  %p201_p3 = scmp.lt.s32.totalorder (!%p169_p2), %s426_s21, 3 }
   0x7   : > { %449 = vmatpush3.bf16.msra.mxu0 (!%p169_p2), %v466_v0  ;;  %p212_p4 = scmp.lt.s32.totalorder (!%p169_p2), %s510_s16, 1 }
   0x8   : > { %450 = vmatprep.subr.bf16.mxu0 (!%p169_p2), %v477_v1 }
   0xb   : > { %451 = vmatpush3.bf16.msra.mxu0 (!%p169_p2), %v467_v2 }
   0xd   : > { %s544_s21 = smov (!%p201_p3, %s426_s21), 3  ;;  %s546_s16 = smov (!%p212_p4, %s510_s16), 1 }
   0xe   : > { %s427_s22 = sshll.u32 %s544_s21, 2  ;;  %s214_s5 = scalar_lea.vmem %s541_s3, %s546_s16 }
   0xf   : > { %s204_s25 = scalar_lea.vmem %s538_s0, %s427_s22  ;;  %s210_s28 = scalar_lea.vmem %s540_s2, %s427_s22 }
  0x10   : > { %v468_v3 = vld [vmem:[%s204_s25] sm:$0xff]   ;;  %s217_s8 = scalar_lea.vmem %s542_s4, %s546_s16 }
  0x11   : > { %453 = vmatmul.mubr.msk.bf16.vlgmr.msra.gmra.mrb[0].mxu0 %vm242_vm1, %v468_v3 }
  0xe4   : > { %v280_v4 = vpop.f32.mrb[0].mxu0 }
  0xe5   : > { %v454_v5 = vpop.f32.mrb[1].mxu0  ;;  %v305_v7 = vmul.f32 %v280_v4, %v280_v4 }
  0xe6   : > { %v283_v6 = vpop.f32.mrb[2].mxu0 }
  0xe7   : > { %v443_v8 = vpack.c.bf16 %v283_v6, %v280_v4  ;;  %v297_v9 = vadd.f32 %v283_v6, %v280_v4  ;;  %v306_v10 = vmul.f32 %v283_v6, %v283_v6  ;;  %v455_v11 = vpop.f32.mrb[3].mxu0 }
  0xe9   : > { %444 = vst [vmem:[%s210_s28] sm:$0xff] %v443_v8   ;;  %v298_v12 = vrot.slane %v297_v9, 4  ;;  %v307_v13 = vadd.f32 %v306_v10, %v305_v7 }
  0xeb   : > { %v299_v14 = vadd.f32 %v298_v12, %v297_v9  ;;  %v308_v15 = vrot.slane %v307_v13, 4 }
  0xed   : > { %v300_v16 = vrot.slane %v299_v14, 2  ;;  %v309_v17 = vadd.f32 %v308_v15, %v307_v13 }
  0xef   : > { %v301_v18 = vadd.f32 %v300_v16, %v299_v14  ;;  %v310_v19 = vrot.slane %v309_v17, 2 }
  0xf1   : > { %v302_v20 = vrot.slane %v301_v18, 1  ;;  %v311_v21 = vadd.f32 %v310_v19, %v309_v17 }
  0xf3   : > { %v303_v22 = vadd.f32 %v302_v20, %v301_v18  ;;  %v312_v23 = vrot.slane %v311_v21, 1 }
  0xf5   : > { %304 = vst [vmem:[%s214_s5] sm:$0x1] %v303_v22  ;;  %v313_v24 = vadd.f32 %v312_v23, %v311_v21 }
  0xf7   : > { %314 = vst [vmem:[%s217_s8] sm:$0x1] %v313_v24 }
  0xf8 PF: > { %s15_s15 = sadd.s32 1, %s475_s15  }
  0xf9   : > { %p12_p5 = scmp.ge.s32.totalorder %s15_s15, 4  }
  0xfb   :  { %14 = sbr.rel (!%p12_p5) target bundleno = 1 (0x1), region = 82 }

// kernel: byol_projection_head.3
= control target key start
LH: loop header
LB: loop body
LE: loop exit
PB: predicated region body
PF: predicated region fallthrough
CT: control target
= control target key end

     0   :  { %s622_s24 = smov 0   ;;  %s690_s0 = inlined_call_operand.vmem [shape: bf16[32,128], index: 0, kind: input, shape index: {}]   ;;  %s691_s1 = inlined_call_operand.vmem [shape: f32[2,1,128], index: 1, kind: input, shape index: {}]   ;;  %s692_s2 = inlined_call_operand.vmem [shape: f32[2,1,128], index: 2, kind: input, shape index: {}]   ;;  %s693_s3 = inlined_call_operand.vmem [shape: f32[1,128], index: 3, kind: input, shape index: {}]   ;;  %s694_s4 = inlined_call_operand.vmem [shape: f32[1,128], index: 4, kind: input, shape index: {}]   ;;  %s695_s5 = inlined_call_operand.vmem [shape: bf16[128,128], index: 5, kind: input, shape index: {}]   ;;  %s696_s6 = inlined_call_operand.vmem [shape: f32[1,128], index: 6, kind: input, shape index: {}]   ;;  %s697_s7 = inlined_call_operand.vmem [shape: f32[32,128], index: 7, kind: output, shape index: {}]  }
   0x1 LB: > { %s499_s25 = sadd.s32 4294967295, %s578_s24   ;;  %p503_p0 = scmp.ge.s32.totalorder %s578_s24, 1  ;;  %s578_s24 = sphi %s622_s24, %s17_s24  }
   0x2   : > { %p238_p1 = scmp.lt.s32.totalorder %s578_s24, 3 }
   0x4   : > { %p239_p2 = pnand %p503_p0, %p238_p1 }
   0x5   : > { %v562_v0 = vld [vmem:[%s695_s5] sm:$0xff] (!%p239_p2)   ;;  %v580_v1 = vmov (!%p239_p2), 0.0   ;;  %v563_v2 = vld [vmem:[%s695_s5 + $0x8] sm:$0xff] (!%p239_p2)   ;;  %vm581_vm0 = vmmov (!%p239_p2), 0   ;;  %v564_v3 = vld [vmem:[%s695_s5 + $0x10] sm:$0xff] (!%p239_p2)   ;;  %vm285_vm1 = vcmask (!%p239_p2), 1040384   ;;  %v311_v24 = vlaneseq (!%p239_p2) }
   0x6   : > { %242 = sbr.rel (%p239_p2) target bundleno = 262 (0x106), region = 48  ;;  %532 = vmatprep.subr.bf16.mxu0 (!%p239_p2), %v580_v1  ;;  %548 = vmatprep.mubr.msk.bf16.mxu0 (!%p239_p2), %vm581_vm0, %v580_v1  ;;  %v283_v4 = vld [vmem:[%s691_s1] sm:$0x1] (!%p239_p2)  ;;  %v284_v5 = vld [vmem:[%s691_s1 + $0x1] sm:$0x1] (!%p239_p2)  ;;  %v565_v11 = vld [vmem:[%s695_s5 + $0x18] sm:$0xff] (!%p239_p2)  }
   0x7   : > { %533 = vmatpush3.bf16.msra.mxu0 (!%p239_p2), %v562_v0  ;;  %v289_v6 = vld [vmem:[%s692_s2] sm:$0x1] (!%p239_p2)  ;;  %v286_v7 = vsel (!%p239_p2), %vm285_vm1, %v283_v4, 0.0  ;;  %v287_v8 = vsel (!%p239_p2), %vm285_vm1, %v284_v5, 0.0  ;;  %v290_v9 = vld [vmem:[%s692_s2 + $0x1] sm:$0x1] (!%p239_p2) }
   0x8   : > { %534 = vmatprep.subr.bf16.mxu0 (!%p239_p2), %v580_v1  ;;  %v291_v10 = vsel (!%p239_p2), %vm285_vm1, %v289_v6, 0.0  ;;  %v288_v12 = vadd.f32 (!%p239_p2), %v287_v8, %v286_v7  ;;  %v292_v13 = vsel (!%p239_p2), %vm285_vm1, %v290_v9, 0.0  ;;  %s504_s19 = sshll.u32 (!%p239_p2), %s499_s25, 1  ;;  %v566_v17 = vld [vmem:[%s695_s5 + $0x20] sm:$0xff] (!%p239_p2)   ;;  %v567_v20 = vld [vmem:[%s695_s5 + $0x28] sm:$0xff] (!%p239_p2)   ;;  %v568_v23 = vld [vmem:[%s695_s5 + $0x30] sm:$0xff] (!%p239_p2)  }
   0x9   : > { %v293_v14 = vadd.f32 (!%p239_p2), %v292_v13, %v291_v10  ;;  %p271_p3 = scmp.lt.s32.totalorder (!%p239_p2), %s504_s19, 3  ;;  %v569_v25 = vld [vmem:[%s695_s5 + $0x38] sm:$0xff] (!%p239_p2)   ;;  %v312_v26 = vshrl.u32 (!%p239_p2), %v311_v24, 7  ;;  %v299_v27 = vld [vmem:[%s693_s3] sm:$0x1] (!%p239_p2) }
   0xa   : > { %v294_v15 = vmul.f32 (!%p239_p2), 0.041666668, %v288_v12  ;;  %v303_v34 = vld [vmem:[%s694_s4] sm:$0x1] (!%p239_p2) }
   0xb   : > { %535 = vmatpush3.bf16.msra.mxu0 (!%p239_p2), %v563_v2  ;;  %v295_v16 = vmul.f32 (!%p239_p2), 0.041666668, %v293_v14  ;;  %v313_v29 = vsub.s32 (!%p239_p2), 0, %v312_v26  ;;  %v508_v46 = vld [vmem:[%s696_s6] ss:$0 sm:$0xff] (!%p239_p2) }
   0xc   : > { %536 = vmatprep.subr.bf16.mxu0 (!%p239_p2), %v580_v1  ;;  %v296_v18 = vmul.f32 (!%p239_p2), %v294_v15, %v294_v15 }
   0xd   : > { %s699_s19 = smov (!%p271_p3, %s504_s19), 3 }
   0xe   : > { %v297_v19 = vsub.f32 %v295_v16, %v296_v18  ;;  %s505_s27 = sshll.u32 %s699_s19, 2  ;;  %s507_s14 = sshll.u32 %s699_s19, 3 }
   0xf   : > { %537 = vmatpush3.bf16.msra.mxu0 %v564_v3  ;;  %s274_s9 = scalar_lea.vmem %s690_s0, %s505_s27  ;;  %s280_s20 = scalar_lea.vmem %s697_s7, %s507_s14 }
  0x10   : > { %538 = vmatprep.subr.bf16.mxu0 %v580_v1  ;;  %v298_v21 = vmax.f32 %v297_v19, 0.0  ;;  %v520_v28 = vld [vmem:[%s274_s9] sm:$0xff]  }
  0x11   : > { %v521_v32 = vunpack.c.l.bf16 %v520_v28  ;;  %v522_v33 = vunpack.c.h.bf16 %v520_v28 }
  0x12   : > { %v300_v22 = vadd.f32 1e-05, %v298_v21 }
  0x13   : > { %539 = vmatpush3.bf16.msra.mxu0 %v565_v11 }
  0x14   : > { %540 = vmatprep.subr.bf16.mxu0 %v580_v1  ;;  %570 = vrsqrt.f32 %v300_v22 }
  0x17   : > { %541 = vmatpush3.bf16.msra.mxu0 %v566_v17 }
  0x18   : > { %542 = vmatprep.subr.bf16.mxu0 %v580_v1 }
  0x1b   : > { %543 = vmatpush3.bf16.msra.mxu0 %v567_v20 }
  0x1c   : > { %544 = vmatprep.subr.bf16.mxu0 %v580_v1 }
  0x1e   : > { %v571_v30 = vpop.eup %570 }
  0x1f   : > { %545 = vmatpush3.bf16.msra.mxu0 %v568_v23  ;;  %v302_v31 = vmul.f32 %v571_v30, %v299_v27 }
  0x20   : > { %546 = vmatprep.subr.bf16.mxu0 %v580_v1 }
  0x21   : > { %v304_v35 = vmul.f32 %v302_v31, %v294_v15  ;;  %v314_v36 = vrot.slane %v302_v31, %v313_v29 }
  0x23   : > { %547 = vmatpush3.bf16.msra.mxu0 %v569_v25  ;;  %v305_v37 = vsub.f32 %v303_v34, %v304_v35  ;;  %v316_v38 = vmul.f32 %v521_v32, %v314_v36  ;;  %v317_v39 = vmul.f32 %v522_v33, %v314_v36 }
  0x25   : > { %v322_v40 = vrot.slane %v305_v37, %v313_v29 }
  0x27   : > { %v324_v41 = vadd.f32 %v322_v40, %v316_v38  ;;  %v325_v42 = vadd.f32 %v322_v40, %v317_v39 }
  0x29   : > { %v326_v43 = vmax.f32 %v324_v41, 0.0  ;;  %v327_v44 = vmax.f32 %v325_v42, 0.0 }
  0x2b   : > { %v328_v45 = vpack.c.bf16 %v327_v44, %v326_v43 }
  0x2d   : > { %549 = vmatmul.mubr.bf16.vlgmr.msra.gmra.mrb[0].mxu0 %v328_v45 }
 0x100   : > { %v434_v47 = vpop.f32.mrb[0].mxu0 }
 0x101   : > { %v435_v48 = vadd.f32 %v508_v46, %v434_v47  ;;  %v550_v49 = vpop.f32.mrb[1].mxu0 }
 0x102   : > { %v437_v50 = vpop.f32.mrb[2].mxu0 }
 0x103   : > { %441 = vst [vmem:[%s280_s20] sm:$0xff] %v435_v48  ;;  %v438_v51 = vadd.f32 %v508_v46, %v437_v50  ;;  %v551_v52 = vpop.f32.mrb[3].mxu0 }
 0x105   : > { %442 = vst [vmem:[%s280_s20 + $0x8] sm:$0xff] %v438_v51 }
 0x106 PF: > { %s17_s24 = sadd.s32 1, %s578_s24  }
 0x107   : > { %p14_p4 = scmp.ge.s32.totalorder %s17_s24, 4  }
 0x109   :  { %16 = sbr.rel (!%p14_p4) target bundleno = 1 (0x1), region = 78 }

</bundles_post_ra>
